<compile_context>
chip_gen: v7x
topology: tpu7x:2x2x1
jax: 0.10.0
libtpu: 0.0.40
codegen_flags: <defaults>
</compile_context>

<pallas_src>
import functools

import jax
import jax.numpy as jnp
from jax.experimental import pallas as pl
from jax.experimental.pallas import tpu as pltpu


# --------------------------------------------------------------------------
# Kernel: shared MLP -> fused (policy heads + value head) -> segment softmax
# --------------------------------------------------------------------------
def _a2c_kernel(num_stocks, n_actions,
                x_ref,
                w1_ref, b1_ref, w2_ref, b2_ref,          # shared MLP
                wc1_ref, bc1_ref, wbd2_ref, bc2_ref,     # fused heads + value
                out_ref):
    f32 = jnp.float32
    bf16 = jnp.bfloat16

    # shared = Linear -> ReLU -> Linear -> ReLU   (bf16 MXU, f32 accumulate)
    x = x_ref[...].astype(bf16)
    h = jnp.dot(x, w1_ref[...], preferred_element_type=f32) + b1_ref[...]
    h = jnp.maximum(h, 0.0)
    feats = jnp.dot(h.astype(bf16), w2_ref[...],
                    preferred_element_type=f32) + b2_ref[...]
    feats = jnp.maximum(feats, 0.0)                                   # [Bb, H]

    # fused heads: one wide layer-1 matmul, one block-diagonal layer-2 matmul
    h_all = jnp.dot(feats.astype(bf16), wc1_ref[...],
                    preferred_element_type=f32) + bc1_ref[...]        # [Bb, S*H + H]
    h_all = jnp.maximum(h_all, 0.0)
    z = jnp.dot(h_all.astype(bf16), wbd2_ref[...],
                preferred_element_type=f32) + bc2_ref[...]            # [Bb, S*A + 1]
    # lanes [0, S*A) = per-stock logits, lane S*A = state value

    SA = num_stocks * n_actions
    cols = jax.lax.broadcasted_iota(jnp.int32, z.shape, 1)
    # Static loop over stocks: fine for small S; switch to
    # lax.fori_loop(..., unroll=True) if num_stocks grows large (>8-16).
    segs = [(cols >= s * n_actions) & (cols < (s + 1) * n_actions)
            for s in range(num_stocks)]

    # per-segment max (stable softmax); value lane keeps m = z so e = 1 there
    m_full = z
    for seg in segs:
        m_s = jnp.max(jnp.where(seg, z, -jnp.inf), axis=-1, keepdims=True)
        m_full = jnp.where(seg, m_s, m_full)
    e = jnp.exp(z - m_full)

    # per-segment denominator; value lane keeps d = 1
    d_full = jnp.ones_like(z)
    for seg in segs:
        d_s = jnp.sum(jnp.where(seg, e, 0.0), axis=-1, keepdims=True)
        d_full = jnp.where(seg, d_s, d_full)

    probs = e * pl.reciprocal(d_full, approx=True)   # EUP vrcp (free slot)
    # single lane-dense store: softmax lanes + raw value lane
    out_ref[...] = jnp.where(cols < SA, probs, z)


# --------------------------------------------------------------------------
# Wrapper
# --------------------------------------------------------------------------
def actor_critic_forward(x, packed, num_stocks, n_actions, hidden_dim,
                         *, block_b=256):
    B, D = x.shape
    H, S, A = hidden_dim, num_stocks, n_actions
    HH = S * H + H          # concatenated hidden width (heads + value)
    SA1 = S * A + 1         # output slab width (all logits + value)

    bb = min(B, block_b)
    nb = pl.cdiv(B, bb)

    def const(shape):       # weight/bias blocks: whole array, VMEM-resident
        return pl.BlockSpec(shape, lambda i: (0, 0))

    slab = pl.pallas_call(
        functools.partial(_a2c_kernel, S, A),
        out_shape=jax.ShapeDtypeStruct((B, SA1), jnp.float32),
        grid=(nb,),
        in_specs=[
            pl.BlockSpec((bb, D), lambda i: (i, 0)),   # x tiles over batch
            const((D, H)), const((1, H)),              # shared layer 1
            const((H, H)), const((1, H)),              # shared layer 2
            const((H, HH)), const((1, HH)),            # fused head layer 1
            const((HH, SA1)), const((1, SA1)),         # block-diag head layer 2
        ],
        out_specs=pl.BlockSpec((bb, SA1), lambda i: (i, 0)),
        compiler_params=pltpu.CompilerParams(
            # batch axis is independent -> megacore sharding on v7x
            dimension_semantics=("parallel",),
        ),
        # NOTE: at scaled-up sizes (large hidden_dim/num_stocks) budget VMEM
        # for v7x's 64 MiB: tile over stocks and set vmem_limit_bytes.
    )(x,
      packed["w1"], packed["b1"], packed["w2"], packed["b2"],
      packed["wc1"], packed["bc1"], packed["wbd2"], packed["bc2"])

    probs = slab[:, :S * A].reshape(B, S, A).transpose(1, 0, 2)   # [S, B, A]
    values = slab[:, S * A:]                                      # [B, 1]
    return probs, values


# --------------------------------------------------------------------------
# Parameter init (PyTorch-nn.Linear-style uniform fan-in init)
#   weights -> bf16 (halves HBM weight traffic; MXU-native), biases -> f32
# --------------------------------------------------------------------------
def init_params(key, input_dim, hidden_dim, n_actions, num_stocks):
    def uniform(k, fan_in, shape, dtype):
        bound = 1.0 / jnp.sqrt(jnp.asarray(fan_in, jnp.float32))
        return jax.random.uniform(k, shape, jnp.float32, -bound, bound).astype(dtype)

    wdt, bdt = jnp.bfloat16, jnp.float32
    ks = jax.random.split(key, 12)
    return {
        "w1": uniform(ks[0], input_dim, (input_dim, hidden_dim), wdt),
        "b1": uniform(ks[1], input_dim, (1, hidden_dim), bdt),
        "w2": uniform(ks[2], hidden_dim, (hidden_dim, hidden_dim), wdt),
        "b2": uniform(ks[3], hidden_dim, (1, hidden_dim), bdt),
        "wh1": uniform(ks[4], hidden_dim, (num_stocks, hidden_dim, hidden_dim), wdt),
        "bh1": uniform(ks[5], hidden_dim, (num_stocks, 1, hidden_dim), bdt),
        "wh2": uniform(ks[6], hidden_dim, (num_stocks, hidden_dim, n_actions), wdt),
        "bh2": uniform(ks[7], hidden_dim, (num_stocks, 1, n_actions), bdt),
        "wv1": uniform(ks[8], hidden_dim, (hidden_dim, hidden_dim), wdt),
        "bv1": uniform(ks[9], hidden_dim, (1, hidden_dim), bdt),
        "wv2": uniform(ks[10], hidden_dim, (hidden_dim, 1), wdt),
        "bv2": uniform(ks[11], hidden_dim, (1, 1), bdt),
    }


# Pack the "natural" per-stock parameters into the fused kernel layout.
def pack_params(p, num_stocks, n_actions, hidden_dim):
    S, H, A = num_stocks, hidden_dim, n_actions
    wc1 = jnp.concatenate([p["wh1"][s] for s in range(S)] + [p["wv1"]], axis=1)
    bc1 = jnp.concatenate([p["bh1"][s] for s in range(S)] + [p["bv1"]], axis=1)
    wbd2 = jnp.zeros((S * H + H, S * A + 1), dtype=p["wh2"].dtype)
    for s in range(S):
        wbd2 = wbd2.at[s * H:(s + 1) * H, s * A:(s + 1) * A].set(p["wh2"][s])
    wbd2 = wbd2.at[S * H:, S * A:].set(p["wv2"])
    bc2 = jnp.concatenate([p["bh2"][s] for s in range(S)] + [p["bv2"]], axis=1)
    return {
        "w1": p["w1"], "b1": p["b1"], "w2": p["w2"], "b2": p["b2"],
        "wc1": wc1, "bc1": bc1, "wbd2": wbd2, "bc2": bc2,
    }


# Pure-JAX reference mirroring the PyTorch forward structure (per-stock heads)
# and the kernel's precision policy (bf16 matmul inputs, f32 accumulation).
def reference_forward(x, p, num_stocks):
    relu = lambda v: jnp.maximum(v, 0.0)
    mm = lambda a, w: jnp.dot(a.astype(jnp.bfloat16), w,
                              preferred_element_type=jnp.float32)
    feats = relu(mm(relu(mm(x, p["w1"]) + p["b1"]), p["w2"]) + p["b2"])
    probs = []
    for s in range(num_stocks):
        hh = relu(mm(feats, p["wh1"][s]) + p["bh1"][s])
        logits = mm(hh, p["wh2"][s]) + p["bh2"][s]
        probs.append(jax.nn.softmax(logits, axis=-1))
    probs = jnp.stack(probs, axis=0)
    value = relu(mm(feats, p["wv1"]) + p["bv1"])
    value = mm(value, p["wv2"]) + p["bv2"]
    return probs, value


if __name__ == "__main__":
    batch, input_dim, hidden_dim, n_actions, num_stocks = 2, 16, 32, 8, 3

    key = jax.random.PRNGKey(0)
    k_x, k_p = jax.random.split(key)
    x = jax.random.normal(k_x, (batch, input_dim), jnp.float32)
    params = init_params(k_p, input_dim, hidden_dim, n_actions, num_stocks)
    packed = pack_params(params, num_stocks, n_actions, hidden_dim)

    probs, values = actor_critic_forward(x, packed, num_stocks, n_actions, hidden_dim)
    probs = jax.block_until_ready(probs)
    values = jax.block_until_ready(values)

    ref_probs, ref_values = reference_forward(x, params, num_stocks)

    assert probs.shape == (num_stocks, batch, n_actions)
    assert values.shape == (batch, 1)
    # probabilities normalize (approx reciprocal -> ~1e-4 relative error)
    assert jnp.allclose(jnp.sum(probs, axis=-1), 1.0, atol=5e-3)
    assert jnp.allclose(probs, ref_probs, atol=5e-3, rtol=1e-2)
    assert jnp.allclose(values, ref_values, atol=5e-3, rtol=1e-2)

    print("KERNEL_OK")
</pallas_src>

<mosaic_0001>
module attributes {stable_mosaic.version = 11 : i64} {
  func.func @_a2c_kernel(%arg0: i32, %arg1: memref<2x16xf32, #tpu.memory_space<vmem>>, %arg2: memref<16x32xbf16, #tpu.memory_space<vmem>>, %arg3: memref<1x32xf32, #tpu.memory_space<vmem>>, %arg4: memref<32x32xbf16, #tpu.memory_space<vmem>>, %arg5: memref<1x32xf32, #tpu.memory_space<vmem>>, %arg6: memref<32x128xbf16, #tpu.memory_space<vmem>>, %arg7: memref<1x128xf32, #tpu.memory_space<vmem>>, %arg8: memref<128x25xbf16, #tpu.memory_space<vmem>>, %arg9: memref<1x25xf32, #tpu.memory_space<vmem>>, %arg10: memref<2x25xf32, #tpu.memory_space<vmem>>) attributes {dimension_semantics = [#tpu.dimension_semantics<parallel>], iteration_bounds = array<i64: 1>, scalar_prefetch = 0 : i64, scratch_operands = 0 : i64, tpu.core_type = #tpu.core_type<tc>, window_params = [{transform_indices = @transform_0, window_bounds = array<i64: 2, 16>}, {pipeline_mode = #tpu.pipeline_mode<synchronous>, transform_indices = @transform_1, window_bounds = array<i64: 16, 32>}, {pipeline_mode = #tpu.pipeline_mode<synchronous>, transform_indices = @transform_2, window_bounds = array<i64: 1, 32>}, {pipeline_mode = #tpu.pipeline_mode<synchronous>, transform_indices = @transform_3, window_bounds = array<i64: 32, 32>}, {pipeline_mode = #tpu.pipeline_mode<synchronous>, transform_indices = @transform_4, window_bounds = array<i64: 1, 32>}, {pipeline_mode = #tpu.pipeline_mode<synchronous>, transform_indices = @transform_5, window_bounds = array<i64: 32, 128>}, {pipeline_mode = #tpu.pipeline_mode<synchronous>, transform_indices = @transform_6, window_bounds = array<i64: 1, 128>}, {pipeline_mode = #tpu.pipeline_mode<synchronous>, transform_indices = @transform_7, window_bounds = array<i64: 128, 25>}, {pipeline_mode = #tpu.pipeline_mode<synchronous>, transform_indices = @transform_8, window_bounds = array<i64: 1, 25>}, {transform_indices = @transform_9, window_bounds = array<i64: 2, 25>}]} {
    %c0 = arith.constant 0 : index
    %c0_0 = arith.constant 0 : index
    %0 = vector.load %arg1[%c0, %c0_0] : memref<2x16xf32, #tpu.memory_space<vmem>>, vector<2x16xf32>
    %1 = arith.truncf %0 : vector<2x16xf32> to vector<2x16xbf16>
    %c0_1 = arith.constant 0 : index
    %c0_2 = arith.constant 0 : index
    %2 = vector.load %arg2[%c0_1, %c0_2] : memref<16x32xbf16, #tpu.memory_space<vmem>>, vector<16x32xbf16>
    %cst = arith.constant dense<0.000000e+00> : vector<2x32xf32>
    %3 = tpu.matmul %1, %2, %cst {dimension_numbers = #tpu.dot_dimension_numbers<[1], [0], [0], [1], [0, 0, 1, 1], [], []>} : vector<2x16xbf16>, vector<16x32xbf16>, vector<2x32xf32> -> vector<2x32xf32>
    %c0_3 = arith.constant 0 : index
    %c0_4 = arith.constant 0 : index
    %4 = vector.load %arg3[%c0_3, %c0_4] : memref<1x32xf32, #tpu.memory_space<vmem>>, vector<1x32xf32>
    %5 = vector.broadcast %4 : vector<1x32xf32> to vector<2x32xf32>
    %6 = arith.addf %3, %5 : vector<2x32xf32>
    %cst_5 = arith.constant 0.000000e+00 : f32
    %7 = vector.broadcast %cst_5 : f32 to vector<2x32xf32>
    %8 = arith.maximumf %6, %7 : vector<2x32xf32>
    %9 = arith.truncf %8 : vector<2x32xf32> to vector<2x32xbf16>
    %c0_6 = arith.constant 0 : index
    %c0_7 = arith.constant 0 : index
    %10 = vector.load %arg4[%c0_6, %c0_7] : memref<32x32xbf16, #tpu.memory_space<vmem>>, vector<32x32xbf16>
    %cst_8 = arith.constant dense<0.000000e+00> : vector<2x32xf32>
    %11 = tpu.matmul %9, %10, %cst_8 {dimension_numbers = #tpu.dot_dimension_numbers<[1], [0], [0], [1], [0, 0, 1, 1], [], []>} : vector<2x32xbf16>, vector<32x32xbf16>, vector<2x32xf32> -> vector<2x32xf32>
    %c0_9 = arith.constant 0 : index
    %c0_10 = arith.constant 0 : index
    %12 = vector.load %arg5[%c0_9, %c0_10] : memref<1x32xf32, #tpu.memory_space<vmem>>, vector<1x32xf32>
    %13 = vector.broadcast %12 : vector<1x32xf32> to vector<2x32xf32>
    %14 = arith.addf %11, %13 : vector<2x32xf32>
    %cst_11 = arith.constant 0.000000e+00 : f32
    %15 = vector.broadcast %cst_11 : f32 to vector<2x32xf32>
    %16 = arith.maximumf %14, %15 : vector<2x32xf32>
    %17 = arith.truncf %16 : vector<2x32xf32> to vector<2x32xbf16>
    %c0_12 = arith.constant 0 : index
    %c0_13 = arith.constant 0 : index
    %18 = vector.load %arg6[%c0_12, %c0_13] : memref<32x128xbf16, #tpu.memory_space<vmem>>, vector<32x128xbf16>
    %cst_14 = arith.constant dense<0.000000e+00> : vector<2x128xf32>
    %19 = tpu.matmul %17, %18, %cst_14 {dimension_numbers = #tpu.dot_dimension_numbers<[1], [0], [0], [1], [0, 0, 1, 1], [], []>} : vector<2x32xbf16>, vector<32x128xbf16>, vector<2x128xf32> -> vector<2x128xf32>
    %c0_15 = arith.constant 0 : index
    %c0_16 = arith.constant 0 : index
    %20 = vector.load %arg7[%c0_15, %c0_16] : memref<1x128xf32, #tpu.memory_space<vmem>>, vector<1x128xf32>
    %21 = vector.broadcast %20 : vector<1x128xf32> to vector<2x128xf32>
    %22 = arith.addf %19, %21 : vector<2x128xf32>
    %cst_17 = arith.constant 0.000000e+00 : f32
    %23 = vector.broadcast %cst_17 : f32 to vector<2x128xf32>
    %24 = arith.maximumf %22, %23 : vector<2x128xf32>
    %25 = arith.truncf %24 : vector<2x128xf32> to vector<2x128xbf16>
    %c0_18 = arith.constant 0 : index
    %c0_19 = arith.constant 0 : index
    %26 = vector.load %arg8[%c0_18, %c0_19] : memref<128x25xbf16, #tpu.memory_space<vmem>>, vector<128x25xbf16>
    %cst_20 = arith.constant dense<0.000000e+00> : vector<2x25xf32>
    %27 = tpu.matmul %25, %26, %cst_20 {dimension_numbers = #tpu.dot_dimension_numbers<[1], [0], [0], [1], [0, 0, 1, 1], [], []>} : vector<2x128xbf16>, vector<128x25xbf16>, vector<2x25xf32> -> vector<2x25xf32>
    %c0_21 = arith.constant 0 : index
    %c0_22 = arith.constant 0 : index
    %28 = vector.load %arg9[%c0_21, %c0_22] : memref<1x25xf32, #tpu.memory_space<vmem>>, vector<1x25xf32>
    %29 = vector.broadcast %28 : vector<1x25xf32> to vector<2x25xf32>
    %30 = arith.addf %27, %29 : vector<2x25xf32>
    %31 = tpu.iota {dimensions = array<i32: 1>} : vector<2x25xi32>
    %c0_i32 = arith.constant 0 : i32
    %32 = vector.broadcast %c0_i32 : i32 to vector<2x25xi32>
    %33 = arith.cmpi sge, %31, %32 : vector<2x25xi32>
    %c8_i32 = arith.constant 8 : i32
    %34 = vector.broadcast %c8_i32 : i32 to vector<2x25xi32>
    %35 = arith.cmpi slt, %31, %34 : vector<2x25xi32>
    %36 = arith.andi %33, %35 : vector<2x25xi1>
    %c8_i32_23 = arith.constant 8 : i32
    %37 = vector.broadcast %c8_i32_23 : i32 to vector<2x25xi32>
    %38 = arith.cmpi sge, %31, %37 : vector<2x25xi32>
    %c16_i32 = arith.constant 16 : i32
    %39 = vector.broadcast %c16_i32 : i32 to vector<2x25xi32>
    %40 = arith.cmpi slt, %31, %39 : vector<2x25xi32>
    %41 = arith.andi %38, %40 : vector<2x25xi1>
    %c16_i32_24 = arith.constant 16 : i32
    %42 = vector.broadcast %c16_i32_24 : i32 to vector<2x25xi32>
    %43 = arith.cmpi sge, %31, %42 : vector<2x25xi32>
    %c24_i32 = arith.constant 24 : i32
    %44 = vector.broadcast %c24_i32 : i32 to vector<2x25xi32>
    %45 = arith.cmpi slt, %31, %44 : vector<2x25xi32>
    %46 = arith.andi %43, %45 : vector<2x25xi1>
    %cst_25 = arith.constant 0xFF800000 : f32
    %47 = vector.broadcast %cst_25 : f32 to vector<2x25xf32>
    %48 = arith.select %36, %30, %47 : vector<2x25xi1>, vector<2x25xf32>
    %cst_26 = arith.constant dense<0xFF800000> : vector<2xf32>
    %49 = vector.multi_reduction <maximumf>, %48, %cst_26 [1] : vector<2x25xf32> to vector<2xf32>
    %50 = vector.shape_cast %49 : vector<2xf32> to vector<2x1xf32>
    %51 = vector.shape_cast %50 : vector<2x1xf32> to vector<2x1xf32>
    %52 = vector.broadcast %51 : vector<2x1xf32> to vector<2x25xf32>
    %53 = arith.select %36, %52, %30 : vector<2x25xi1>, vector<2x25xf32>
    %cst_27 = arith.constant 0xFF800000 : f32
    %54 = vector.broadcast %cst_27 : f32 to vector<2x25xf32>
    %55 = arith.select %41, %30, %54 : vector<2x25xi1>, vector<2x25xf32>
    %cst_28 = arith.constant dense<0xFF800000> : vector<2xf32>
    %56 = vector.multi_reduction <maximumf>, %55, %cst_28 [1] : vector<2x25xf32> to vector<2xf32>
    %57 = vector.shape_cast %56 : vector<2xf32> to vector<2x1xf32>
    %58 = vector.shape_cast %57 : vector<2x1xf32> to vector<2x1xf32>
    %59 = vector.broadcast %58 : vector<2x1xf32> to vector<2x25xf32>
    %60 = arith.select %41, %59, %53 : vector<2x25xi1>, vector<2x25xf32>
    %cst_29 = arith.constant 0xFF800000 : f32
    %61 = vector.broadcast %cst_29 : f32 to vector<2x25xf32>
    %62 = arith.select %46, %30, %61 : vector<2x25xi1>, vector<2x25xf32>
    %cst_30 = arith.constant dense<0xFF800000> : vector<2xf32>
    %63 = vector.multi_reduction <maximumf>, %62, %cst_30 [1] : vector<2x25xf32> to vector<2xf32>
    %64 = vector.shape_cast %63 : vector<2xf32> to vector<2x1xf32>
    %65 = vector.shape_cast %64 : vector<2x1xf32> to vector<2x1xf32>
    %66 = vector.broadcast %65 : vector<2x1xf32> to vector<2x25xf32>
    %67 = arith.select %46, %66, %60 : vector<2x25xi1>, vector<2x25xf32>
    %68 = arith.subf %30, %67 : vector<2x25xf32>
    %69 = math.exp %68 : vector<2x25xf32>
    %cst_31 = arith.constant 1.000000e+00 : f32
    %70 = vector.broadcast %cst_31 : f32 to vector<2x25xf32>
    %cst_32 = arith.constant 0.000000e+00 : f32
    %71 = vector.broadcast %cst_32 : f32 to vector<2x25xf32>
    %72 = arith.select %36, %69, %71 : vector<2x25xi1>, vector<2x25xf32>
    %cst_33 = arith.constant dense<0.000000e+00> : vector<2xf32>
    %73 = vector.multi_reduction <add>, %72, %cst_33 [1] : vector<2x25xf32> to vector<2xf32>
    %74 = vector.shape_cast %73 : vector<2xf32> to vector<2x1xf32>
    %75 = vector.shape_cast %74 : vector<2x1xf32> to vector<2x1xf32>
    %76 = vector.broadcast %75 : vector<2x1xf32> to vector<2x25xf32>
    %77 = arith.select %36, %76, %70 : vector<2x25xi1>, vector<2x25xf32>
    %cst_34 = arith.constant 0.000000e+00 : f32
    %78 = vector.broadcast %cst_34 : f32 to vector<2x25xf32>
    %79 = arith.select %41, %69, %78 : vector<2x25xi1>, vector<2x25xf32>
    %cst_35 = arith.constant dense<0.000000e+00> : vector<2xf32>
    %80 = vector.multi_reduction <add>, %79, %cst_35 [1] : vector<2x25xf32> to vector<2xf32>
    %81 = vector.shape_cast %80 : vector<2xf32> to vector<2x1xf32>
    %82 = vector.shape_cast %81 : vector<2x1xf32> to vector<2x1xf32>
    %83 = vector.broadcast %82 : vector<2x1xf32> to vector<2x25xf32>
    %84 = arith.select %41, %83, %77 : vector<2x25xi1>, vector<2x25xf32>
    %cst_36 = arith.constant 0.000000e+00 : f32
    %85 = vector.broadcast %cst_36 : f32 to vector<2x25xf32>
    %86 = arith.select %46, %69, %85 : vector<2x25xi1>, vector<2x25xf32>
    %cst_37 = arith.constant dense<0.000000e+00> : vector<2xf32>
    %87 = vector.multi_reduction <add>, %86, %cst_37 [1] : vector<2x25xf32> to vector<2xf32>
    %88 = vector.shape_cast %87 : vector<2xf32> to vector<2x1xf32>
    %89 = vector.shape_cast %88 : vector<2x1xf32> to vector<2x1xf32>
    %90 = vector.broadcast %89 : vector<2x1xf32> to vector<2x25xf32>
    %91 = arith.select %46, %90, %84 : vector<2x25xi1>, vector<2x25xf32>
    %92 = tpu.reciprocal %91 {approx = true} : vector<2x25xf32> -> vector<2x25xf32>
    %93 = arith.mulf %69, %92 : vector<2x25xf32>
    %c24_i32_38 = arith.constant 24 : i32
    %94 = vector.broadcast %c24_i32_38 : i32 to vector<2x25xi32>
    %95 = arith.cmpi slt, %31, %94 : vector<2x25xi32>
    %96 = arith.select %95, %93, %30 : vector<2x25xi1>, vector<2x25xf32>
    %c0_39 = arith.constant 0 : index
    %c0_40 = arith.constant 0 : index
    %97 = vector.load %arg10[%c0_39, %c0_40] : memref<2x25xf32, #tpu.memory_space<vmem>>, vector<2x25xf32>
    tpu.vector_store %arg10[%c0_39, %c0_40], %96 {strides = array<i32>} : memref<2x25xf32, #tpu.memory_space<vmem>>, vector<2x25xf32>,
    return
  }
  func.func @transform_0(%arg0: i32) -> (i32, i32) {
    %c0_i32 = arith.constant 0 : i32
    %c0_i32_0 = arith.constant 0 : i32
    return %arg0, %c0_i32 : i32, i32
  }
  func.func @transform_1(%arg0: i32) -> (i32, i32) {
    %c0_i32 = arith.constant 0 : i32
    %c0_i32_0 = arith.constant 0 : i32
    %c0_i32_1 = arith.constant 0 : i32
    return %c0_i32, %c0_i32_0 : i32, i32
  }
  func.func @transform_2(%arg0: i32) -> (i32, i32) {
    %c0_i32 = arith.constant 0 : i32
    %c0_i32_0 = arith.constant 0 : i32
    %c0_i32_1 = arith.constant 0 : i32
    return %c0_i32, %c0_i32_0 : i32, i32
  }
  func.func @transform_3(%arg0: i32) -> (i32, i32) {
    %c0_i32 = arith.constant 0 : i32
    %c0_i32_0 = arith.constant 0 : i32
    %c0_i32_1 = arith.constant 0 : i32
    return %c0_i32, %c0_i32_0 : i32, i32
  }
  func.func @transform_4(%arg0: i32) -> (i32, i32) {
    %c0_i32 = arith.constant 0 : i32
    %c0_i32_0 = arith.constant 0 : i32
    %c0_i32_1 = arith.constant 0 : i32
    return %c0_i32, %c0_i32_0 : i32, i32
  }
  func.func @transform_5(%arg0: i32) -> (i32, i32) {
    %c0_i32 = arith.constant 0 : i32
    %c0_i32_0 = arith.constant 0 : i32
    %c0_i32_1 = arith.constant 0 : i32
    return %c0_i32, %c0_i32_0 : i32, i32
  }
  func.func @transform_6(%arg0: i32) -> (i32, i32) {
    %c0_i32 = arith.constant 0 : i32
    %c0_i32_0 = arith.constant 0 : i32
    %c0_i32_1 = arith.constant 0 : i32
    return %c0_i32, %c0_i32_0 : i32, i32
  }
  func.func @transform_7(%arg0: i32) -> (i32, i32) {
    %c0_i32 = arith.constant 0 : i32
    %c0_i32_0 = arith.constant 0 : i32
    %c0_i32_1 = arith.constant 0 : i32
    return %c0_i32, %c0_i32_0 : i32, i32
  }
  func.func @transform_8(%arg0: i32) -> (i32, i32) {
    %c0_i32 = arith.constant 0 : i32
    %c0_i32_0 = arith.constant 0 : i32
    %c0_i32_1 = arith.constant 0 : i32
    return %c0_i32, %c0_i32_0 : i32, i32
  }
  func.func @transform_9(%arg0: i32) -> (i32, i32) {
    %c0_i32 = arith.constant 0 : i32
    %c0_i32_0 = arith.constant 0 : i32
    return %arg0, %c0_i32 : i32, i32
  }
}

</mosaic_0001>

<bundles_post_ra>
// kernel: tpu_custom_call.1
= control target key start
LH: loop header
LB: loop body
LE: loop exit
PB: predicated region body
PF: predicated region fallthrough
CT: control target
= control target key end

     0   :  { %v531_v1 = vmov 0.0   ;;  %vm532_vm0 = vmmov 0   ;;  %vm51_vm1 = vcmask 130048   ;;  %s710_s0 = inlined_call_operand.vmem [shape: f32[2,16], index: 0, kind: input, shape index: {}]   ;;  %s711_s1 = inlined_call_operand.vmem [shape: bf16[16,32], index: 1, kind: input, shape index: {}]   ;;  %s712_s2 = inlined_call_operand.vmem [shape: f32[1,32], index: 2, kind: input, shape index: {}]   ;;  %s713_s3 = inlined_call_operand.vmem [shape: bf16[32,32], index: 3, kind: input, shape index: {}]   ;;  %s714_s4 = inlined_call_operand.vmem [shape: f32[1,32], index: 4, kind: input, shape index: {}]   ;;  %s715_s5 = inlined_call_operand.vmem [shape: bf16[32,128], index: 5, kind: input, shape index: {}]   ;;  %s716_s6 = inlined_call_operand.vmem [shape: f32[1,128], index: 6, kind: input, shape index: {}]   ;;  %s717_s7 = inlined_call_operand.vmem [shape: bf16[128,25], index: 7, kind: input, shape index: {}]   ;;  %s718_s8 = inlined_call_operand.vmem [shape: f32[1,25], index: 8, kind: input, shape index: {}]   ;;  %s719_s9 = inlined_call_operand.hbm [shape: f32[2,25], index: 9, kind: output, shape index: {}]  }
   0x1   :  { %v490_v0 = vld [vmem:[%s711_s1] sm:$0xff]   ;;  %445 = vmatprep.subr.bf16.mxu0 %v531_v1  ;;  %467 = vmatprep.subr.bf16.mxu1 %v531_v1 }
   0x2   :  { %v34_v2 = vld [vmem:[%s710_s0] sm:$0x3]  ;;  %446 = vmatpush3.bf16.msra.mxu0 %v490_v0  ;;  %447 = vmatprep.mubr.msk.bf16.mxu0 %vm532_vm0, %v531_v1 }
   0x3   :  { %v35_v3 = vpack.c.bf16 %v34_v2, %v34_v2  ;;  %v491_v4 = vld [vmem:[%s713_s3] sm:$0xff]   ;;  %451 = vmatprep.subr.bf16.mxu0 %v531_v1  ;;  %483 = vmatprep.mubr.msk.bf16.mxu1 %vm532_vm0, %v531_v1 }
   0x5   :  { %448 = vmatmul.mubr.msk.bf16.vlgmr.msra.gmra.mrb[0].mxu0 %vm51_vm1, %v35_v3 }
   0x6   :  { %452 = vmatpush3.bf16.msra.mxu0 %v491_v4  ;;  %455 = vmatprep.mubr.msk.bf16.mxu0 %vm532_vm0, %v531_v1 }
   0x7   :  { %453 = vmatprep.subr.bf16.mxu0 %v531_v1 }
   0x8   :  { %14 = vsyncpa [#allocation3], 0  ;;  %v492_v5 = vld [vmem:[%s713_s3 + $0x8] sm:$0xff]   ;;  %v408_v6 = vld [vmem:[%s712_s2] ss:$0 sm:$0xff]  ;;  %vm120_vm2 = vcmask 261120   ;;  %v345_v40 = vlaneseq }
   0x9   :  { %v493_v13 = vld [vmem:[%s715_s5] sm:$0xff]   ;;  %v494_v15 = vld [vmem:[%s715_s5 + $0x8] sm:$0xff]   ;;  %v497_v18 = vld [vmem:[%s717_s7 + $0x10] sm:$0xff]   ;;  %vm357_vm9 = vcmask 197632  }
   0xa   :  { %454 = vmatpush3.bf16.msra.mxu0 %v492_v5  ;;  %v495_v16 = vld [vmem:[%s717_s7] sm:$0xff]   ;;  %v496_v17 = vld [vmem:[%s717_s7 + $0x8] sm:$0xff]   ;;  %v498_v19 = vld [vmem:[%s717_s7 + $0x18] sm:$0xff]   ;;  %v346_v41 = vand.u32 127, %v345_v40 }
   0xb   :  { %459 = vmatprep.subr.bf16.mxu0 %v531_v1  ;;  %468 = vmatpush3.bf16.msra.mxu1 %v495_v16  ;;  %v499_v20 = vld [vmem:[%s717_s7 + $0x20] sm:$0xff]   ;;  %v500_v21 = vld [vmem:[%s717_s7 + $0x28] sm:$0xff]   ;;  %v501_v30 = vld [vmem:[%s717_s7 + $0x30] sm:$0xff]  }
   0xc   :  { %469 = vmatprep.subr.bf16.mxu1 %v531_v1  ;;  %v411_v22 = vld [vmem:[%s714_s4] ss:$0 sm:$0xff]  ;;  %v502_v31 = vld [vmem:[%s717_s7 + $0x38] sm:$0xff]   ;;  %vm353_vm3 = vcmp.ge.s32.totalorder %v346_v41, 16  ;;  %vm354_vm4 = vcmp.lt.s32.totalorder %v346_v41, 24  ;;  %vm350_vm5 = vcmp.ge.s32.totalorder %v346_v41, 8 }
   0xd   :  { %v415_v32 = vld [vmem:[%s716_s6] ss:$0 sm:$0xff]  ;;  %vm351_vm6 = vcmp.lt.s32.totalorder %v346_v41, 16  ;;  %vm662_vm7 = vmand %vm353_vm3, %vm354_vm4  ;;  %vm348_vm8 = vcmp.lt.s32.totalorder %v346_v41, 8  ;;  %s533_s6 = smov [#allocation2]  }
   0xe   :  { %v419_v42 = vld [vmem:[%s718_s8] ss:$0 sm:$0xff]  ;;  %vm666_vm10 = vmand %vm350_vm5, %vm351_vm6  ;;  %s400_s7 = sshll.u32 %s533_s6, 4  ;;  %s401_s7 = int_to_ptr.vmem [resolvable:$true] %s400_s7 }
   0xf   :  { %470 = vmatpush3.bf16.msra.mxu1 %v496_v17  ;;  %s507_s8 = scalar_lea.vmem %s401_s7, 32  ;;  %p512_p1 = scmp.lt.s32.totalorder %s401_s7, %s401_s7 }
  0x10   :  { %471 = vmatprep.subr.bf16.mxu1 %v531_v1  ;;  %p508_p0 = scmp.ne.s32.totalorder %s401_s7, %s507_s8  ;;  %p513_p2 = scmp.lt.s32.totalorder %s507_s8, %s507_s8 }
  0x12   :  { %p514_p3 = por %p513_p2, %p512_p1 }
  0x13   :  { %472 = vmatpush3.bf16.msra.mxu1 %v497_v18 }
  0x14   :  { %473 = vmatprep.subr.bf16.mxu1 %v531_v1  ;;  %p515_p4 = pnand %p514_p3, %p508_p0 }
  0x17   :  { %474 = vmatpush3.bf16.msra.mxu1 %v498_v19 }
  0x18   :  { %475 = vmatprep.subr.bf16.mxu1 %v531_v1 }
  0x1b   :  { %476 = vmatpush3.bf16.msra.mxu1 %v499_v20 }
  0x1c   :  { %477 = vmatprep.subr.bf16.mxu1 %v531_v1 }
  0x1f   :  { %478 = vmatpush3.bf16.msra.mxu1 %v500_v21 }
  0x20   :  { %479 = vmatprep.subr.bf16.mxu1 %v531_v1 }
  0x23   :  { %480 = vmatpush3.bf16.msra.mxu1 %v501_v30 }
  0x24   :  { %481 = vmatprep.subr.bf16.mxu1 %v531_v1 }
  0x27   :  { %482 = vmatpush3.bf16.msra.mxu1 %v502_v31 }
  0xd8   :  { %v89_v7 = vpop.f32.mrb[0].mxu0 }
  0xd9   :  { %v90_v8 = vadd.f32 %v408_v6, %v89_v7  ;;  %v449_v9 = vpop.f32.mrb[1].mxu0 }
  0xda   :  { %v92_v10 = vpop.f32.mrb[2].mxu0 }
  0xdb   :  { %v95_v11 = vmax.f32 %v90_v8, 0.0  ;;  %v450_v12 = vpop.f32.mrb[3].mxu0 }
  0xdd   :  { %v96_v14 = vpack.c.bf16 %v95_v11, %v95_v11 }
  0xdf   :  { %456 = vmatmul.mubr.msk.bf16.vlgmr.msra.gmra.mrb[4].mxu0 %vm120_vm2, %v96_v14 }
  0xe0   :  { %460 = vmatpush3.bf16.msra.mxu0 %v493_v13  ;;  %463 = vmatprep.mubr.msk.bf16.mxu0 %vm532_vm0, %v531_v1 }
  0xe1   :  { %461 = vmatprep.subr.bf16.mxu0 %v531_v1 }
  0xe4   :  { %462 = vmatpush3.bf16.msra.mxu0 %v494_v15 }
 0x1b2   :  { %v158_v23 = vpop.f32.mrb[4].mxu0 }
 0x1b3   :  { %v159_v24 = vadd.f32 %v411_v22, %v158_v23  ;;  %v457_v25 = vpop.f32.mrb[5].mxu0 }
 0x1b4   :  { %v161_v26 = vpop.f32.mrb[6].mxu0 }
 0x1b5   :  { %v164_v27 = vmax.f32 %v159_v24, 0.0  ;;  %v458_v28 = vpop.f32.mrb[7].mxu0 }
 0x1b7   :  { %v165_v29 = vpack.c.bf16 %v164_v27, %v164_v27 }
 0x1b9   :  { %464 = vmatmul.mubr.msk.bf16.vlgmr.msra.gmra.mrb[8].mxu0 %vm120_vm2, %v165_v29 }
 0x28c   :  { %v226_v33 = vpop.f32.mrb[8].mxu0 }
 0x28d   :  { %v227_v34 = vadd.f32 %v415_v32, %v226_v33  ;;  %v465_v35 = vpop.f32.mrb[9].mxu0 }
 0x28e   :  { %v229_v36 = vpop.f32.mrb[10].mxu0 }
 0x28f   :  { %v232_v37 = vmax.f32 %v227_v34, 0.0  ;;  %v466_v38 = vpop.f32.mrb[11].mxu0 }
 0x291   :  { %v233_v39 = vpack.c.bf16 %v232_v37, %v232_v37 }
 0x293   :  { %484 = vmatmul.mubr.bf16.vlgmr.msra.gmra.mrb[0].mxu1 %v233_v39 }
 0x366   :  { %v339_v43 = vpop.f32.mrb[0].mxu1 }
 0x367   :  { %v340_v45 = vadd.f32 %v419_v42, %v339_v43  ;;  %v485_v46 = vpop.f32.mrb[1].mxu1 }
 0x368   :  { %v342_v47 = vpop.f32.mrb[2].mxu1 }
 0x369   :  { %v486_v49 = vpop.f32.mrb[3].mxu1  ;;  %v367_v50 = vsel %vm662_vm7, %v340_v45, -inf  ;;  %v356_v51 = vsel %vm348_vm8, %v340_v45, -inf  ;;  %v362_v54 = vsel %vm666_vm10, %v340_v45, -inf }
 0x36a   :  { %v368_v52 = vsel %vm357_vm9, %v367_v50, -inf  ;;  %v358_v53 = vsel %vm357_vm9, %v356_v51, -inf  ;;  %v363_v55 = vsel %vm357_vm9, %v362_v54, -inf }
 0x36b   :  { %369 = vmax.xlane.f32.xlu1 %v368_v52  ;;  %359 = vmax.xlane.f32.xlu0 %v358_v53 }
 0x36f   :  { %364 = vmax.xlane.f32.xlu0 %v363_v55 }
 0x3f8   :  { %v360_v56 = vpop.xlane.xlu0 %359  ;;  %v370_v59 = vpop.xlane.xlu1 %369 }
 0x3f9   :  { %v361_v57 = vsel %vm348_vm8, %v360_v56, %v340_v45 }
 0x3fc   :  { %v365_v58 = vpop.xlane.xlu0 %364 }
 0x3fd   :  { %v366_v60 = vsel %vm666_vm10, %v365_v58, %v361_v57 }
 0x3fe   :  { %v371_v61 = vsel %vm662_vm7, %v370_v59, %v366_v60 }
 0x3ff   :  { %v372_v62 = vsub.f32 %v340_v45, %v371_v61 }
 0x401   :  { %v373_v63 = vmul.f32 1.442695, %v372_v62 }
 0x403   :  { %503 = vpow2.f32 %v373_v63 }
 0x40d   :  { %v504_v0 = vpop.eup %503 }
 0x40e   :  { %v380_v1 = vsel %vm666_vm10, %v504_v0, 0.0  ;;  %v375_v2 = vsel %vm348_vm8, %v504_v0, 0.0  ;;  %v385_v5 = vsel %vm662_vm7, %v504_v0, 0.0 }
 0x40f   :  { %v381_v3 = vsel %vm357_vm9, %v380_v1, 0.0  ;;  %v376_v4 = vsel %vm357_vm9, %v375_v2, 0.0  ;;  %v386_v6 = vsel %vm357_vm9, %v385_v5, 0.0 }
 0x410   :  { %382 = vadd.xlane.f32.xlu0 %v381_v3  ;;  %377 = vadd.xlane.f32.xlu1 %v376_v4 }
 0x414   :  { %387 = vadd.xlane.f32.xlu1 %v386_v6 }
 0x49d   :  { %v378_v7 = vpop.xlane.xlu1 %377  ;;  %v383_v8 = vpop.xlane.xlu0 %382 }
 0x49e   :  { %v379_v9 = vsel %vm348_vm8, %v378_v7, 1.0 }
 0x49f   :  { %v384_v10 = vsel %vm666_vm10, %v383_v8, %v379_v9 }
 0x4a1   :  { %v388_v11 = vpop.xlane.xlu1 %387 }
 0x4a2   :  { %v389_v12 = vsel %vm662_vm7, %v388_v11, %v384_v10 }
 0x4a3   :  { %505 = vrcp.f32 %v389_v12 }
 0x4ad   :  { %v506_v13 = vpop.eup %505 }
 0x4ae   :  { %v391_v14 = vmul.f32 %v506_v13, %v504_v0 }
 0x4b0   :  { %v392_v15 = vsel %vm354_vm4, %v391_v14, %v340_v45 }
 0x4b1   :  { %393 = vst.msk [vmem:[#allocation2] sm:$0x3] %vm357_vm9, %v392_v15 }
 0x4b2   :  { %518 = shalt.err (!%p515_p4)
}
 0x4b3   :  { %s519_s18 = scalar_lea.hbm %s719_s9, 32 }
 0x4b4   :  { %p520_p5 = scmp.ne.s32.totalorder %s719_s9, %s519_s18  ;;  %p523_p6 = scmp.lt.u32.totalorder %s519_s18, %s719_s9 }
 0x4b6   :  { %p525_p7 = pnand %p523_p6, %p520_p5 }
 0x4b8   :  { %528 = shalt.err (!%p525_p7)
}
 0x4b9   :  { %403 = dma.vmem_to_hbm [thread:$0]  %s401_s7, 32, %s719_s9, [#allocation3]  }
 0x4ba   :  { %529 = dma.done.wait [#allocation3], 32  }
 0x4bb   :  { %530 = vsyncadd [#allocation3], 4294967264 }
 0x4bc   :  { %407 = vsyncpa [#allocation3], 1 }

</bundles_post_ra>
